<compile_context>
chip_gen: v7x
topology: tpu7x:2x2x1
jax: 0.10.0
libtpu: 0.0.40
codegen_flags: <defaults>
</compile_context>

<pallas_src>
import functools

import jax
import jax.numpy as jnp
from jax.experimental import pallas as pl
from jax.experimental.pallas import tpu as pltpu


# ---------------------------------------------------------------------------
# Trace-time helpers: generation-aware block sizing (host-side arithmetic only).
# ---------------------------------------------------------------------------

def _tpu_vmem_capacity_bytes():
    """Physical VMEM per TensorCore; conservative 64 MiB fallback (v7x-like)."""
    try:
        info = pltpu.get_tpu_info()
        cap = int(getattr(info, "vmem_capacity_bytes", 0))
        if (16 << 20) <= cap <= (1 << 30):
            return cap
    except Exception:
        pass
    return 64 << 20


def _largest_divisor_leq(n, cap):
    cap = max(1, min(n, cap))
    for d in range(cap, 0, -1):
        if n % d == 0:
            return d
    return 1


def _pick_row_block(rows, target_rows):
    """Multiple-of-8 row block <= target, giving >= 2 grid steps when rows > 8.

    Prefers an exact multiple-of-8 divisor near the target (no padded tail); otherwise
    returns a non-dividing block and the caller uses a pl.cdiv grid (padded tail block).
    """
    if rows <= 8:
        return rows                                   # single block == full dim (legal layout)
    cap = ((rows - 1) // 8) * 8                       # largest multiple of 8 with >= 2 steps
    target = max(8, min((int(target_rows) // 8) * 8, cap))
    best = 0
    d = 8
    while d <= target:
        if rows % d == 0:
            best = d
        d += 8
    if best * 2 >= target:                            # exact divisor close to target: take it
        return best
    return target


def _block_plan(row_elems, rows, itemsize):
    """(row_block, vmem_limit_bytes) for blocks of (br, row_elems) in -> (br, 4*row_elems) out."""
    cap = _tpu_vmem_capacity_bytes()
    budget = int(cap * 0.85)
    slack = 8 << 20                                   # E operand, dot temporaries, misc
    # double-buffered in+out = 2*(1+4) = 10x input bytes; +4x headroom for matmul results.
    in_target = max(1 << 16, (budget - slack) // 14)
    target_rows = max(8, in_target // max(1, row_elems * itemsize))
    br = _pick_row_block(rows, target_rows)
    need = 14 * br * row_elems * itemsize + slack
    vmem_limit = int(min(max(need, 16 << 20), budget))
    return br, vmem_limit


# ---------------------------------------------------------------------------
# Constant 0/1 expansion matrices (built with plain jnp in the wrapper).
# ---------------------------------------------------------------------------

def _lane_dup_matrix(k, dtype):
    # E[i, c] = 1 iff i == c // 2   =>   (x @ E)[.., c] == x[.., c // 2]
    return (jnp.arange(k)[:, None] == (jnp.arange(2 * k) // 2)[None, :]).astype(dtype)


def _fat_dup_matrix(w, f, dtype):
    # Fat input row packs F image rows of width W (K = F*W); the fat output row is the
    # corresponding 2F upsampled rows (width 2W each), in order:
    #   out[j, s*2W + b] = in[j, (s//2)*W + b//2]
    k = f * w
    c = jnp.arange(4 * k)
    src = (c // (2 * w) // 2) * w + (c % (2 * w)) // 2
    return (jnp.arange(k)[:, None] == src[None, :]).astype(dtype)


# ---------------------------------------------------------------------------
# Pallas kernels.
# ---------------------------------------------------------------------------

def _up2x_fat_kernel(x_ref, e_ref, o_ref):
    # x_ref: (br, K) fat rows; e_ref: (K, 4K) 0/1 expansion; o_ref: (br, 4K).
    # One well-shaped MXU matmul (M = br, K <= 128) does both H and W duplication.
    o_ref[...] = jnp.dot(
        x_ref[...], e_ref[...], preferred_element_type=jnp.float32
    ).astype(o_ref.dtype)


def _up2x_wide_kernel(x_ref, e_ref, o_ref, *, w, chunks):
    # x_ref: (br, W); e_ref: (128, 256) 0/1 lane-duplication matrix; o_ref: (br, 4W),
    # where output row r holds image rows 2r and 2r+1 back to back.
    # Row (H) duplication = two dense stores of the same value (no second matmul).
    for off, k in chunks:                              # static unroll: ceil(W/128) chunks
        y = jnp.dot(
            x_ref[:, off:off + k], e_ref[:k, :2 * k],
            preferred_element_type=jnp.float32,
        ).astype(o_ref.dtype)
        o_ref[:, 2 * off:2 * (off + k)] = y                          # image row 2r
        o_ref[:, 2 * w + 2 * off:2 * w + 2 * (off + k)] = y          # image row 2r + 1


# ---------------------------------------------------------------------------
# pallas_call wrappers on the flattened (N*C*H, W) view.
# ---------------------------------------------------------------------------

def _up2x_rows_wide(x2):
    """2x nearest upsample of (R, W) rows; W >= 128 (any W, 128-chunked lane dup)."""
    rows, w = x2.shape
    dt = x2.dtype
    itemsize = jnp.dtype(dt).itemsize
    tw = 128
    chunks = tuple((off, min(tw, w - off)) for off in range(0, w, tw))
    br, vmem = _block_plan(w, rows, itemsize)
    e = _lane_dup_matrix(tw, dt)                       # (128, 256)
    out = pl.pallas_call(
        functools.partial(_up2x_wide_kernel, w=w, chunks=chunks),
        out_shape=jax.ShapeDtypeStruct((rows, 4 * w), dt),
        grid=(pl.cdiv(rows, br),),
        in_specs=[
            pl.BlockSpec((br, w), lambda i: (i, 0)),
            pl.BlockSpec((tw, 2 * tw), lambda i: (0, 0)),
        ],
        out_specs=pl.BlockSpec((br, 4 * w), lambda i: (i, 0)),
        compiler_params=pltpu.CompilerParams(
            dimension_semantics=("parallel",),
            vmem_limit_bytes=vmem,
        ),
    )(x2, e)
    # (rows, 4W) == (rows, 2, 2W)  ->  (2*rows, 2W): free row-major merge.
    return out.reshape(2 * rows, 2 * w)


def _up2x_rows_fat(x2):
    """2x nearest upsample of (R, W) rows; W < 128: pack F rows per fat row (K = F*W <= 128)."""
    rows, w = x2.shape
    dt = x2.dtype
    itemsize = jnp.dtype(dt).itemsize
    f = _largest_divisor_leq(rows, max(1, 128 // w))
    k = f * w
    rf = rows // f
    xf = x2.reshape(rf, k)                             # free merge of adjacent dims
    e = _fat_dup_matrix(w, f, dt)                      # (K, 4K), at most (128, 512)
    br, vmem = _block_plan(k, rf, itemsize)
    out = pl.pallas_call(
        _up2x_fat_kernel,
        out_shape=jax.ShapeDtypeStruct((rf, 4 * k), dt),
        grid=(pl.cdiv(rf, br),),
        in_specs=[
            pl.BlockSpec((br, k), lambda i: (i, 0)),
            pl.BlockSpec((k, 4 * k), lambda i: (0, 0)),
        ],
        out_specs=pl.BlockSpec((br, 4 * k), lambda i: (i, 0)),
        compiler_params=pltpu.CompilerParams(
            dimension_semantics=("parallel",),
            vmem_limit_bytes=vmem,
        ),
    )(xf, e)
    # (rf, 4K) == (rf, 2F, 2W)  ->  (2*rows, 2W): free row-major split/merge.
    return out.reshape(2 * rows, 2 * w)


# ---------------------------------------------------------------------------
# UpBlock forward.
# ---------------------------------------------------------------------------

def up_block(x, mode="nearest"):
    """Equivalent of UpBlock(mode=...).forward(x) for NCHW input (scale_factor=2, nearest)."""
    if mode != "nearest":
        # TODO(synk): mode='conv' (ConvTranspose2d(ch, ch, 2, stride=2)) and the
        # align_corners=True interpolation modes ('bilinear', ...) are not implemented.
        raise NotImplementedError(f"UpBlock mode {mode!r} not implemented")
    if x.ndim != 4:
        # TODO(synk): 3-D (NCL) / 5-D (NCDHW) nearest upsampling not implemented.
        raise NotImplementedError("only NCHW (4-D) inputs are supported")

    n, c, h, w = x.shape
    # For nearest 2x upsampling, out[2g + a, 2v + b] = x2[g, v] with flattened row index
    # g = (n*C + c)*H + h, so channels never mix and every reshape below merges/splits
    # adjacent dims only (no transpose, no extra HBM pass around the kernel).
    x2 = x.reshape(n * c * h, w)
    out2 = _up2x_rows_wide(x2) if w >= 128 else _up2x_rows_fat(x2)
    return out2.reshape(n, c, 2 * h, 2 * w)


# ---------------------------------------------------------------------------
# Self-test.
# ---------------------------------------------------------------------------

if __name__ == "__main__":
    key = jax.random.PRNGKey(0)
    k1, k2, k3, k4 = jax.random.split(key, 4)

    up = jax.jit(up_block, static_argnames="mode")

    def ref_up(x):
        return jnp.repeat(jnp.repeat(x, 2, axis=2), 2, axis=3)

    # Tolerance is loose only to be robust to the MXU's default f32 pass mode; the
    # expansion matrices are 0/1 so the kernel output is a copy of the input values.
    def check(x, y):
        assert jnp.allclose(y, ref_up(x), rtol=5e-3, atol=1e-5), "nearest upsample mismatch"

    # 1) Default UpBlock(): nn.Upsample(scale_factor=2, mode='nearest'), small NCHW input
    #    (narrow-W / fat path, F=8, K=128).
    x = jax.random.normal(k1, (2, 4, 16, 16), dtype=jnp.float32)
    y = up(x)
    jax.block_until_ready(y)
    assert y.shape == (2, 4, 32, 32), y.shape
    check(x, y)

    # 2) W multiple of 128 (wide path, single 128-lane chunk, 2 grid steps).
    xw = jax.random.normal(k2, (1, 2, 8, 128), dtype=jnp.float32)
    yw = up(xw)
    jax.block_until_ready(yw)
    assert yw.shape == (1, 2, 16, 256), yw.shape
    check(xw, yw)

    # 3) Row count not a multiple of the row block (exercises the pl.cdiv padded-tail block).
    xt = jax.random.normal(k3, (1, 1, 20, 128), dtype=jnp.float32)
    yt = up(xt)
    jax.block_until_ready(yt)
    assert yt.shape == (1, 1, 40, 256), yt.shape
    check(xt, yt)

    # 4) Odd small shape (fat path with F=5, K=80: lane widths equal to full dims).
    xo = jax.random.normal(k4, (1, 3, 5, 16), dtype=jnp.float32)
    yo = up(xo)
    jax.block_until_ready(yo)
    assert yo.shape == (1, 3, 10, 32), yo.shape
    check(xo, yo)

    print("KERNEL_OK")
</pallas_src>

<mosaic_0001>
module attributes {stable_mosaic.version = 11 : i64} {
  func.func @_up2x_fat_kernel(%arg0: i32, %arg1: memref<8x128xf32, #tpu.memory_space<vmem>>, %arg2: memref<128x512xf32, #tpu.memory_space<vmem>>, %arg3: memref<8x512xf32, #tpu.memory_space<vmem>>) attributes {dimension_semantics = [#tpu.dimension_semantics<parallel>], iteration_bounds = array<i64: 2>, scalar_prefetch = 0 : i64, scratch_operands = 0 : i64, tpu.core_type = #tpu.core_type<tc>, window_params = [{transform_indices = @transform_0, window_bounds = array<i64: 8, 128>}, {pipeline_mode = #tpu.pipeline_mode<synchronous>, transform_indices = @transform_1, window_bounds = array<i64: 128, 512>}, {transform_indices = @transform_2, window_bounds = array<i64: 8, 512>}]} {
    %c0 = arith.constant 0 : index
    %c0_0 = arith.constant 0 : index
    %0 = vector.load %arg1[%c0, %c0_0] : memref<8x128xf32, #tpu.memory_space<vmem>>, vector<8x128xf32>
    %c0_1 = arith.constant 0 : index
    %c0_2 = arith.constant 0 : index
    %1 = vector.load %arg2[%c0_1, %c0_2] : memref<128x512xf32, #tpu.memory_space<vmem>>, vector<128x512xf32>
    %cst = arith.constant dense<0.000000e+00> : vector<8x512xf32>
    %2 = tpu.matmul %0, %1, %cst {dimension_numbers = #tpu.dot_dimension_numbers<[1], [0], [0], [1], [0, 0, 1, 1], [], []>} : vector<8x128xf32>, vector<128x512xf32>, vector<8x512xf32> -> vector<8x512xf32>
    %c0_3 = arith.constant 0 : index
    %c0_4 = arith.constant 0 : index
    %3 = vector.load %arg3[%c0_3, %c0_4] : memref<8x512xf32, #tpu.memory_space<vmem>>, vector<8x512xf32>
    tpu.vector_store %arg3[%c0_3, %c0_4], %2 {strides = array<i32>} : memref<8x512xf32, #tpu.memory_space<vmem>>, vector<8x512xf32>,
    return
  }
  func.func @transform_0(%arg0: i32) -> (i32, i32) {
    %c0_i32 = arith.constant 0 : i32
    %c0_i32_0 = arith.constant 0 : i32
    return %arg0, %c0_i32 : i32, i32
  }
  func.func @transform_1(%arg0: i32) -> (i32, i32) {
    %c0_i32 = arith.constant 0 : i32
    %c0_i32_0 = arith.constant 0 : i32
    %c0_i32_1 = arith.constant 0 : i32
    return %c0_i32, %c0_i32_0 : i32, i32
  }
  func.func @transform_2(%arg0: i32) -> (i32, i32) {
    %c0_i32 = arith.constant 0 : i32
    %c0_i32_0 = arith.constant 0 : i32
    return %arg0, %c0_i32 : i32, i32
  }
}

</mosaic_0001>

<bundles_post_ra>
// kernel: up_block.1
= control target key start
LH: loop header
LB: loop body
LE: loop exit
PB: predicated region body
PF: predicated region fallthrough
CT: control target
= control target key end

     0   :  { %s515_s9 = smov 0   ;;  %s738_s0 = inlined_call_operand.vmem [shape: f32[16,128], index: 0, kind: input, shape index: {}]   ;;  %s739_s1 = inlined_call_operand.vmem [shape: f32[128,512], index: 1, kind: input, shape index: {}]   ;;  %s740_s2 = inlined_call_operand.vmem [shape: f32[16,512], index: 2, kind: output, shape index: {}]  }
   0x1 LB: > { %s407_s10 = sadd.s32 4294967295, %s497_s9   ;;  %p411_p0 = scmp.ge.s32.totalorder %s497_s9, 1  ;;  %s497_s9 = sphi %s515_s9, %s12_s9  }
   0x2   : > { %p111_p1 = scmp.lt.s32.totalorder %s497_s9, 3 }
   0x4   : > { %p112_p2 = pnand %p411_p0, %p111_p1 }
   0x5   : > { %v143_v0 = vld [vmem:[%s739_s1 + $0x8] sm:$0xff] (!%p112_p2)  ;;  %v145_v2 = vld [vmem:[%s739_s1 + $0x18] sm:$0xff] (!%p112_p2)  ;;  %v142_v5 = vld [vmem:[%s739_s1] sm:$0xff] (!%p112_p2)  ;;  %v499_v7 = vmov (!%p112_p2), 0.0   ;;  %p675_p3 = scmp.lt.s32.totalorder (!%p112_p2), %s407_s10, 1 }
   0x6   : > { %115 = sbr.rel (%p112_p2) target bundleno = 256 (0x100), region = 28  ;;  %v147_v1 = vld [vmem:[%s739_s1 + $0x28] sm:$0xff] (!%p112_p2)  ;;  %v149_v4 = vld [vmem:[%s739_s1 + $0x38] sm:$0xff] (!%p112_p2)  ;;  %v146_v6 = vld [vmem:[%s739_s1 + $0x20] sm:$0xff] (!%p112_p2)  ;;  %270 = vmatprep.mubr.f32.mxu0 (!%p112_p2), %v499_v7  ;;  %341 = vmatprep.mubr.f32.mxu1 (!%p112_p2), %v499_v7 }
   0x7   : > { %v418_v3 = vpack.c.bf16 (!%p112_p2), %v147_v1, %v143_v0  ;;  %v450_v8 = vpack.c.bf16 (!%p112_p2), %v149_v4, %v145_v2  ;;  %v420_v9 = vpack.c.bf16 (!%p112_p2), %v146_v6, %v142_v5  ;;  %v144_v10 = vld [vmem:[%s739_s1 + $0x10] sm:$0xff] (!%p112_p2)  ;;  %v151_v12 = vld [vmem:[%s739_s1 + $0x48] sm:$0xff] (!%p112_p2)  ;;  %v153_v15 = vld [vmem:[%s739_s1 + $0x58] sm:$0xff] (!%p112_p2) }
   0x8   : > { %v148_v11 = vld [vmem:[%s739_s1 + $0x30] sm:$0xff] (!%p112_p2)  ;;  %v155_v14 = vld [vmem:[%s739_s1 + $0x68] sm:$0xff] (!%p112_p2)  ;;  %v157_v16 = vld [vmem:[%s739_s1 + $0x78] sm:$0xff] (!%p112_p2) }
   0x9   : > { %419 = vmatprep.subr.bf16.mxu0 (!%p112_p2), %v418_v3  ;;  %v452_v13 = vpack.c.bf16 (!%p112_p2), %v148_v11, %v144_v10  ;;  %451 = vmatprep.subr.bf16.mxu1 (!%p112_p2), %v450_v8  ;;  %v422_v17 = vpack.c.bf16 (!%p112_p2), %v155_v14, %v151_v12  ;;  %v454_v18 = vpack.c.bf16 (!%p112_p2), %v157_v16, %v153_v15  ;;  %v150_v19 = vld [vmem:[%s739_s1 + $0x40] sm:$0xff] (!%p112_p2)  ;;  %v152_v21 = vld [vmem:[%s739_s1 + $0x50] sm:$0xff] (!%p112_p2)  ;;  %v159_v24 = vld [vmem:[%s739_s1 + $0x88] sm:$0xff] (!%p112_p2) }
   0xa   : > { %421 = vmatpush1.bf16.msra.mxu0 (!%p112_p2), %v420_v9  ;;  %v154_v20 = vld [vmem:[%s739_s1 + $0x60] sm:$0xff] (!%p112_p2)  ;;  %v156_v23 = vld [vmem:[%s739_s1 + $0x70] sm:$0xff] (!%p112_p2)  ;;  %v163_v25 = vld [vmem:[%s739_s1 + $0xa8] sm:$0xff] (!%p112_p2) }
   0xb   : > { %453 = vmatpush1.bf16.msra.mxu1 (!%p112_p2), %v452_v13  ;;  %v424_v22 = vpack.c.bf16 (!%p112_p2), %v154_v20, %v150_v19  ;;  %423 = vmatprep.subr.bf16.mxu0 (!%p112_p2), %v422_v17  ;;  %v456_v26 = vpack.c.bf16 (!%p112_p2), %v156_v23, %v152_v21  ;;  %v426_v27 = vpack.c.bf16 (!%p112_p2), %v163_v25, %v159_v24  ;;  %v161_v28 = vld [vmem:[%s739_s1 + $0x98] sm:$0xff] (!%p112_p2)  ;;  %v158_v30 = vld [vmem:[%s739_s1 + $0x80] sm:$0xff] (!%p112_p2)  ;;  %v160_v33 = vld [vmem:[%s739_s1 + $0x90] sm:$0xff] (!%p112_p2) }
   0xc   : > { %455 = vmatprep.subr.bf16.mxu1 (!%p112_p2), %v454_v18  ;;  %v165_v29 = vld [vmem:[%s739_s1 + $0xb8] sm:$0xff] (!%p112_p2)  ;;  %v162_v32 = vld [vmem:[%s739_s1 + $0xa0] sm:$0xff] (!%p112_p2)  ;;  %v164_v34 = vld [vmem:[%s739_s1 + $0xb0] sm:$0xff] (!%p112_p2) }
   0xd   : > { %v458_v31 = vpack.c.bf16 %v165_v29, %v161_v28  ;;  %v428_v35 = vpack.c.bf16 %v162_v32, %v158_v30  ;;  %v167_v36 = vld [vmem:[%s739_s1 + $0xc8] sm:$0xff]  ;;  %v169_v38 = vld [vmem:[%s739_s1 + $0xd8] sm:$0xff]  ;;  %v460_v39 = vpack.c.bf16 %v164_v34, %v160_v33  ;;  %v166_v42 = vld [vmem:[%s739_s1 + $0xc0] sm:$0xff]  ;;  %s743_s10 = smov (!%p675_p3, %s407_s10), 1 }
   0xe   : > { %425 = vmatpush1.bf16.msra.mxu0 %v424_v22  ;;  %v171_v37 = vld [vmem:[%s739_s1 + $0xe8] sm:$0xff]  ;;  %v173_v41 = vld [vmem:[%s739_s1 + $0xf8] sm:$0xff]  ;;  %v170_v43 = vld [vmem:[%s739_s1 + $0xe0] sm:$0xff]  ;;  %s412_s8 = sshll.u32 %s743_s10, 3  ;;  %s417_s14 = sshll.u32 %s743_s10, 5 }
   0xf   : > { %457 = vmatpush1.bf16.msra.mxu1 %v456_v26  ;;  %427 = vmatprep.subr.bf16.mxu0 %v426_v27  ;;  %v430_v40 = vpack.c.bf16 %v171_v37, %v167_v36  ;;  %v462_v44 = vpack.c.bf16 %v173_v41, %v169_v38  ;;  %v168_v45 = vld [vmem:[%s739_s1 + $0xd0] sm:$0xff]  ;;  %v175_v47 = vld [vmem:[%s739_s1 + $0x108] sm:$0xff]  ;;  %v177_v49 = vld [vmem:[%s739_s1 + $0x118] sm:$0xff]  ;;  %v432_v51 = vpack.c.bf16 %v170_v43, %v166_v42  ;;  %s135_s13 = scalar_lea.vmem %s738_s0, %s412_s8  ;;  %s140_s17 = scalar_lea.vmem %s740_s2, %s417_s14 }
  0x10   : > { %459 = vmatprep.subr.bf16.mxu1 %v458_v31  ;;  %v172_v46 = vld [vmem:[%s739_s1 + $0xf0] sm:$0xff]  ;;  %v179_v48 = vld [vmem:[%s739_s1 + $0x128] sm:$0xff]  ;;  %v181_v50 = vld [vmem:[%s739_s1 + $0x138] sm:$0xff] }
  0x11   : > { %v464_v52 = vpack.c.bf16 %v172_v46, %v168_v45  ;;  %v434_v53 = vpack.c.bf16 %v179_v48, %v175_v47  ;;  %v174_v54 = vld [vmem:[%s739_s1 + $0x100] sm:$0xff]  ;;  %v176_v56 = vld [vmem:[%s739_s1 + $0x110] sm:$0xff]  ;;  %v466_v57 = vpack.c.bf16 %v181_v50, %v177_v49  ;;  %v183_v59 = vld [vmem:[%s739_s1 + $0x148] sm:$0xff] }
  0x12   : > { %429 = vmatpush1.bf16.msra.mxu0 %v428_v35  ;;  %v178_v55 = vld [vmem:[%s739_s1 + $0x120] sm:$0xff]  ;;  %v180_v58 = vld [vmem:[%s739_s1 + $0x130] sm:$0xff]  ;;  %v187_v60 = vld [vmem:[%s739_s1 + $0x168] sm:$0xff] }
  0x13   : > { %461 = vmatpush1.bf16.msra.mxu1 %v460_v39  ;;  %431 = vmatprep.subr.bf16.mxu0 %v430_v40  ;;  %v185_v61 = vld [vmem:[%s739_s1 + $0x158] sm:$0xff]  ;;  %v436_v63 = vpack.c.bf16 %v178_v55, %v174_v54  ;;  %v468_v0 = vpack.c.bf16 %v180_v58, %v176_v56  ;;  %v438_v1 = vpack.c.bf16 %v187_v60, %v183_v59  ;;  %v182_v2 = vld [vmem:[%s739_s1 + $0x140] sm:$0xff]  ;;  %v184_v4 = vld [vmem:[%s739_s1 + $0x150] sm:$0xff] }
  0x14   : > { %463 = vmatprep.subr.bf16.mxu1 %v462_v44  ;;  %v189_v62 = vld [vmem:[%s739_s1 + $0x178] sm:$0xff]  ;;  %v186_v3 = vld [vmem:[%s739_s1 + $0x160] sm:$0xff]  ;;  %v188_v6 = vld [vmem:[%s739_s1 + $0x170] sm:$0xff] }
  0x15   : > { %v470_v5 = vpack.c.bf16 %v189_v62, %v185_v61  ;;  %v191_v7 = vld [vmem:[%s739_s1 + $0x188] sm:$0xff]  ;;  %v193_v9 = vld [vmem:[%s739_s1 + $0x198] sm:$0xff]  ;;  %v440_v11 = vpack.c.bf16 %v186_v3, %v182_v2  ;;  %v472_v12 = vpack.c.bf16 %v188_v6, %v184_v4  ;;  %v190_v14 = vld [vmem:[%s739_s1 + $0x180] sm:$0xff] }
  0x16   : > { %433 = vmatpush1.bf16.msra.mxu0 %v432_v51  ;;  %v195_v8 = vld [vmem:[%s739_s1 + $0x1a8] sm:$0xff]  ;;  %v197_v10 = vld [vmem:[%s739_s1 + $0x1b8] sm:$0xff]  ;;  %v194_v15 = vld [vmem:[%s739_s1 + $0x1a0] sm:$0xff] }
  0x17   : > { %465 = vmatpush1.bf16.msra.mxu1 %v464_v52  ;;  %435 = vmatprep.subr.bf16.mxu0 %v434_v53  ;;  %v442_v13 = vpack.c.bf16 %v195_v8, %v191_v7  ;;  %v192_v16 = vld [vmem:[%s739_s1 + $0x190] sm:$0xff]  ;;  %v474_v17 = vpack.c.bf16 %v197_v10, %v193_v9  ;;  %v199_v19 = vld [vmem:[%s739_s1 + $0x1c8] sm:$0xff]  ;;  %v201_v21 = vld [vmem:[%s739_s1 + $0x1d8] sm:$0xff]  ;;  %v444_v23 = vpack.c.bf16 %v194_v15, %v190_v14 }
  0x18   : > { %467 = vmatprep.subr.bf16.mxu1 %v466_v57  ;;  %v196_v18 = vld [vmem:[%s739_s1 + $0x1b0] sm:$0xff]  ;;  %v203_v20 = vld [vmem:[%s739_s1 + $0x1e8] sm:$0xff]  ;;  %v205_v22 = vld [vmem:[%s739_s1 + $0x1f8] sm:$0xff] }
  0x19   : > { %v476_v24 = vpack.c.bf16 %v196_v18, %v192_v16  ;;  %v446_v25 = vpack.c.bf16 %v203_v20, %v199_v19  ;;  %v198_v26 = vld [vmem:[%s739_s1 + $0x1c0] sm:$0xff]  ;;  %v478_v28 = vpack.c.bf16 %v205_v22, %v201_v21  ;;  %v200_v29 = vld [vmem:[%s739_s1 + $0x1d0] sm:$0xff] }
  0x1a   : > { %437 = vmatpush1.bf16.msra.mxu0 %v436_v63  ;;  %v202_v27 = vld [vmem:[%s739_s1 + $0x1e0] sm:$0xff]  ;;  %v204_v30 = vld [vmem:[%s739_s1 + $0x1f0] sm:$0xff] }
  0x1b   : > { %469 = vmatpush1.bf16.msra.mxu1 %v468_v0  ;;  %439 = vmatprep.subr.bf16.mxu0 %v438_v1  ;;  %v448_v31 = vpack.c.bf16 %v202_v27, %v198_v26  ;;  %v480_v32 = vpack.c.bf16 %v204_v30, %v200_v29  ;;  %v141_v33 = vld [vmem:[%s135_s13] sm:$0xff] }
  0x1c   : > { %471 = vmatprep.subr.bf16.mxu1 %v470_v5 }
  0x1e   : > { %441 = vmatpush1.bf16.msra.mxu0 %v440_v11 }
  0x1f   : > { %473 = vmatpush1.bf16.msra.mxu1 %v472_v12  ;;  %443 = vmatprep.subr.bf16.mxu0 %v442_v13 }
  0x20   : > { %475 = vmatprep.subr.bf16.mxu1 %v474_v17 }
  0x22   : > { %445 = vmatpush1.bf16.msra.mxu0 %v444_v23 }
  0x23   : > { %477 = vmatpush1.bf16.msra.mxu1 %v476_v24  ;;  %447 = vmatprep.subr.bf16.mxu0 %v446_v25 }
  0x24   : > { %479 = vmatprep.subr.bf16.mxu1 %v478_v28 }
  0x26   : > { %449 = vmatpush1.bf16.msra.mxu0 %v448_v31 }
  0x27   : > { %481 = vmatpush1.bf16.msra.mxu1 %v480_v32 }
  0x29   : > { %271 = vmatmul.mubr.f32.vlgmr.msra.gmra.mrb[0].mxu0 %v141_v33 }
  0x2a   : > { %342 = vmatmul.mubr.f32.vlgmr.msra.gmra.mrb[0].mxu1 %v141_v33 }
  0xfc   : > { %v272_v34 = vpop.f32.mrb[0].mxu0 }
  0xfd   : > { %348 = vst [vmem:[%s140_s17] sm:$0xff] %v272_v34  ;;  %v343_v35 = vpop.f32.mrb[0].mxu1  ;;  %v274_v36 = vpop.f32.mrb[1].mxu0 }
  0xfe   : > { %350 = vst [vmem:[%s140_s17 + $0x10] sm:$0xff] %v343_v35  ;;  %349 = vst [vmem:[%s140_s17 + $0x8] sm:$0xff] %v274_v36  ;;  %v345_v37 = vpop.f32.mrb[1].mxu1 }
  0xff   : > { %351 = vst [vmem:[%s140_s17 + $0x18] sm:$0xff] %v345_v37 }
 0x100 PF: > { %s12_s9 = sadd.s32 1, %s497_s9  }
 0x101   : > { %p9_p4 = scmp.ge.s32.totalorder %s12_s9, 4  }
 0x103   :  { %11 = sbr.rel (!%p9_p4) target bundleno = 1 (0x1), region = 58 }

</bundles_post_ra>
